<compile_context>
chip_gen: v6e
topology: v6e:2x2x1
jax: 0.10.0
libtpu: 0.0.40
codegen_flags: <defaults>
</compile_context>

<pallas_src>
import functools
import math

import jax
import jax.numpy as jnp
from jax import lax
from jax.experimental import pallas as pl
from jax.experimental.pallas import tpu as pltpu

LANES = 128                  # lane (fast) dimension of every slab
ACC_R = 8                    # sublane height of the resident accumulator block
_MIB = 1 << 20
CORE_SPLIT_MIN_BLOCKS = 16   # only core-split when the loop is long enough

_TEST_BLOCK_ROWS = None      # test hook: force tiny blocks to exercise ragged paths


# --------------------- hardware-aware sizing helpers ------------------------

@functools.lru_cache(maxsize=None)
def _device_kind():
    try:
        return jax.devices()[0].device_kind.lower()
    except Exception:
        return ""


def _is_v7x():
    kind = _device_kind()
    return ("v7" in kind) or ("7x" in kind) or ("tpu7" in kind)


def _num_tensorcores():
    # TODO(synk): verify with an xprof trace that CORE_PARALLEL actually shards the
    # leading grid axis across both v7x TensorCores; fall back to core_map if not.
    return 2 if _is_v7x() else 1


def _reduce_block_bytes():
    """Per-stream block bytes for the reduction paths (3 streams x 2 buffers must
    stay inside the scoped-VMEM default: v5e 16 MiB, v6e/v7x 32 MiB)."""
    if _is_v7x():
        return 4 * _MIB            # 3 x 2 x 4 = 24 MiB  (v7x: HBM ~3.2 TB/s)
    if "v6" in _device_kind():
        return 2 * _MIB            # 3 x 2 x 2 = 12 MiB
    return 1 * _MIB                # v5e / unknown: 3 x 2 x 1 = 6 MiB


def _none_block_bytes():
    # 'none' path streams up to 4 arrays (p, t, w, out); cap at 2 MiB/stream.
    return min(_reduce_block_bytes(), 2 * _MIB)


def _target_rows(block_bytes, itemsize):
    if _TEST_BLOCK_ROWS is not None:
        return _TEST_BLOCK_ROWS
    # multiple of 32 rows: clean (8,128)/(16,128)/(32,128) packing for f32/bf16/i8
    return max(32, (block_bytes // (itemsize * LANES)) // 32 * 32)


def _rows_per_block(block_bytes, itemsize, rows):
    if rows < ACC_R:
        return rows
    return max(ACC_R, min(_target_rows(block_bytes, itemsize),
                          (rows // ACC_R) * ACC_R))


# ----------------------------- flat-slab kernels ----------------------------

def _accumulate(o_ref, x, block_r):
    """Fold a (block_r, 128) f32 tile into the (8, 128) accumulator with pure
    vreg-wise VPU adds (the (block_r//8, 8, 128) reshape is layout-free)."""
    if block_r % ACC_R == 0:
        o_ref[...] += jnp.sum(x.reshape(block_r // ACC_R, ACC_R, LANES), axis=0)
    else:
        # tiny-tensor fallback (block_r < 8 rows): fold into the first row.
        o_ref[0:1, :] += jnp.sum(x, axis=0, keepdims=True)


def _sse_kernel(p_ref, t_ref, o_ref, *, block_r, nrows, bpc, masked, split):
    """Accumulate sum((p - t)^2) into a per-core (8, 128) f32 accumulator."""
    if split:
        c, i = pl.program_id(0), pl.program_id(1)
    else:
        c, i = 0, pl.program_id(0)

    @pl.when(i == 0)
    def _():
        o_ref[...] = jnp.zeros_like(o_ref)

    d = p_ref[...].astype(jnp.float32) - t_ref[...].astype(jnp.float32)
    sq = d * d

    if not masked:
        _accumulate(o_ref, sq, block_r)
    else:
        # Only the trailing ragged / clamped-duplicate blocks pay for the mask.
        gidx = c * bpc + i
        full_blocks = nrows // block_r

        @pl.when(gidx < full_blocks)
        def _():
            _accumulate(o_ref, sq, block_r)

        @pl.when(gidx >= full_blocks)
        def _():
            rid = lax.broadcasted_iota(jnp.int32, (block_r, 1), 0) + gidx * block_r
            _accumulate(o_ref, jnp.where(rid < nrows, sq, 0.0), block_r)


def _wsse_kernel(p_ref, t_ref, w_ref, o_sq_ref, o_w_ref, *,
                 block_r, nrows, bpc, masked, split):
    """Accumulate sum(w * (p - t)^2) and sum(w) (full-shape weight path)."""
    if split:
        c, i = pl.program_id(0), pl.program_id(1)
    else:
        c, i = 0, pl.program_id(0)

    @pl.when(i == 0)
    def _():
        o_sq_ref[...] = jnp.zeros_like(o_sq_ref)
        o_w_ref[...] = jnp.zeros_like(o_w_ref)

    p = p_ref[...].astype(jnp.float32)
    t = t_ref[...].astype(jnp.float32)
    w = w_ref[...].astype(jnp.float32)
    d = p - t
    sq = w * d * d

    def _acc(sq_v, w_v):
        _accumulate(o_sq_ref, sq_v, block_r)
        _accumulate(o_w_ref, w_v, block_r)

    if not masked:
        _acc(sq, w)
    else:
        gidx = c * bpc + i
        full_blocks = nrows // block_r

        @pl.when(gidx < full_blocks)
        def _():
            _acc(sq, w)

        @pl.when(gidx >= full_blocks)
        def _():
            rid = lax.broadcasted_iota(jnp.int32, (block_r, 1), 0) + gidx * block_r
            valid = rid < nrows
            _acc(jnp.where(valid, sq, 0.0), jnp.where(valid, w, 0.0))


def _sq_none_kernel(p_ref, t_ref, o_ref):
    d = p_ref[...] - t_ref[...]
    o_ref[...] = d * d


def _wsq_none_kernel(p_ref, t_ref, w_ref, o_ref):
    d = p_ref[...] - t_ref[...]
    o_ref[...] = w_ref[...] * d * d


# --------------------- per-channel (structured) kernels ---------------------

def _pc_sse_kernel(p_ref, t_ref, o_ref, *, rb, rpc, masked):
    """Per-channel sum of (p - t)^2 over a (cb, rb, 128) tile, accumulated into
    a VMEM-resident (cb, 1, 128) block."""
    j = pl.program_id(1)

    @pl.when(j == 0)
    def _():
        o_ref[...] = jnp.zeros_like(o_ref)

    d = p_ref[...].astype(jnp.float32) - t_ref[...].astype(jnp.float32)
    sq = d * d

    def _acc(x):
        o_ref[...] += jnp.sum(x, axis=1, keepdims=True)

    if not masked:
        _acc(sq)
    else:
        last = pl.num_programs(1) - 1

        @pl.when(j < last)
        def _():
            _acc(sq)

        @pl.when(j == last)
        def _():
            rid = lax.broadcasted_iota(jnp.int32, (1, rb, LANES), 1) + j * rb
            _acc(jnp.where(rid < rpc, sq, 0.0))


def _pc_wsq_none_kernel(p_ref, t_ref, w_ref, o_ref):
    """Elementwise w[c] * (p - t)^2 with a per-channel scalar weight block."""
    d = p_ref[...] - t_ref[...]
    o_ref[...] = w_ref[...] * d * d


# ----------------------------- launchers ------------------------------------

def _to_slab(x):
    """Flatten row-major to a lane-dense (rows, 128) slab (pure reshape when
    numel % 128 == 0; otherwise only a <128-element zero pad is appended)."""
    flat = x.reshape(-1)
    n = flat.shape[0]
    pad = (-n) % LANES
    if pad:
        flat = jnp.pad(flat, (0, pad))
    return flat.reshape(-1, LANES), n


def _launch_flat_reduction(kernel, inputs, num_outputs):
    rows = inputs[0].shape[0]
    itemsize = max(jnp.dtype(x.dtype).itemsize for x in inputs)
    block_r = _rows_per_block(_reduce_block_bytes(), itemsize, rows)
    nblocks = pl.cdiv(rows, block_r)

    ncores = _num_tensorcores()
    if ncores > 1 and nblocks < CORE_SPLIT_MIN_BLOCKS:
        ncores = 1
    split = ncores > 1
    bpc = pl.cdiv(nblocks, ncores)
    masked = (ncores * bpc * block_r) != rows

    if split:
        # The core split can duplicate at most one block; its data is clamped in
        # bounds here and masked to zero inside the kernel.
        def in_map(c, i):
            return (jnp.minimum(c * bpc + i, nblocks - 1), 0)

        out_map = lambda c, i: (c, 0)
        grid = (ncores, bpc)
        semantics = (getattr(pltpu, "CORE_PARALLEL", "parallel"),
                     getattr(pltpu, "ARBITRARY", "arbitrary"))
    else:
        in_map = lambda i: (i, 0)
        out_map = lambda i: (0, 0)
        grid = (bpc,)
        semantics = ("arbitrary",)

    in_spec = pl.BlockSpec((block_r, LANES), in_map)
    out_spec = pl.BlockSpec((ACC_R, LANES), out_map)

    kern = functools.partial(kernel, block_r=block_r, nrows=rows, bpc=bpc,
                             masked=masked, split=split)

    n_elems = rows * LANES
    cost = pl.CostEstimate(
        flops=4 * n_elems * len(inputs),
        transcendentals=0,
        bytes_accessed=sum(int(x.size) * jnp.dtype(x.dtype).itemsize for x in inputs)
        + num_outputs * ncores * ACC_R * LANES * 4)

    out_shapes = tuple(jax.ShapeDtypeStruct((ncores * ACC_R, LANES), jnp.float32)
                       for _ in range(num_outputs))
    out_specs = tuple(out_spec for _ in range(num_outputs))
    if num_outputs == 1:
        out_shapes, out_specs = out_shapes[0], out_specs[0]

    return pl.pallas_call(
        kern,
        out_shape=out_shapes,
        grid_spec=pltpu.PrefetchScalarGridSpec(
            num_scalar_prefetch=0,
            grid=grid,
            in_specs=[in_spec] * len(inputs),
            out_specs=out_specs),
        compiler_params=pltpu.CompilerParams(dimension_semantics=semantics),
        cost_estimate=cost,
    )(*inputs)


def _elementwise_sq(p2d, t2d, w2d=None):
    rows = p2d.shape[0]
    itemsize = jnp.dtype(p2d.dtype).itemsize
    block_r = _rows_per_block(_none_block_bytes(), itemsize, rows)
    nblocks = pl.cdiv(rows, block_r)
    spec = pl.BlockSpec((block_r, LANES), lambda i: (i, 0))
    if w2d is None:
        kern, ins = _sq_none_kernel, (p2d, t2d)
    else:
        kern, ins = _wsq_none_kernel, (p2d, t2d, w2d)
    n_elems = rows * LANES
    cost = pl.CostEstimate(flops=3 * n_elems, transcendentals=0,
                           bytes_accessed=(len(ins) + 1) * n_elems * itemsize)
    return pl.pallas_call(
        kern,
        out_shape=jax.ShapeDtypeStruct(p2d.shape, p2d.dtype),
        grid_spec=pltpu.PrefetchScalarGridSpec(
            num_scalar_prefetch=0,
            grid=(nblocks,),
            in_specs=[spec] * len(ins),
            out_specs=spec),
        compiler_params=pltpu.CompilerParams(dimension_semantics=("parallel",)),
        cost_estimate=cost,
    )(*ins)


def _pc_block_geometry(nc, rpc, itemsize, budget):
    """Pick (cb channels, rb rows-per-channel) per grid step for the structured
    (nc, rpc, 128) view, targeting `budget` bytes per input stream per step."""
    target = _target_rows(budget, itemsize)
    if rpc <= target:
        rb = rpc                                  # whole channel per step
        cb = min(nc, max(1, budget // (rpc * LANES * itemsize)))
    else:
        rb = target                               # multiple of 8 (or 32)
        cb = 1
    return cb, rb


def _per_channel_sse(p, t):
    """sum((p - t)^2) per (batch, channel) -> f32 (N*C,).  Only 2 HBM streams;
    used to apply small per-channel weights without materializing a broadcast."""
    shape = p.shape
    nc = shape[0] * shape[1]
    s = math.prod(shape[2:])
    rpc = s // LANES                              # caller guarantees s % 128 == 0
    p3 = p.reshape(nc, rpc, LANES)
    t3 = t.reshape(nc, rpc, LANES)
    itemsize = jnp.dtype(p.dtype).itemsize
    cb, rb = _pc_block_geometry(nc, rpc, itemsize, _reduce_block_bytes())
    masked = (rpc % rb) != 0
    grid = (pl.cdiv(nc, cb), pl.cdiv(rpc, rb))

    kern = functools.partial(_pc_sse_kernel, rb=rb, rpc=rpc, masked=masked)
    out = pl.pallas_call(
        kern,
        out_shape=jax.ShapeDtypeStruct((nc, 1, LANES), jnp.float32),
        grid_spec=pltpu.PrefetchScalarGridSpec(
            num_scalar_prefetch=0,
            grid=grid,
            in_specs=[pl.BlockSpec((cb, rb, LANES), lambda g, j: (g, j, 0))] * 2,
            out_specs=pl.BlockSpec((cb, 1, LANES), lambda g, j: (g, 0, 0))),
        compiler_params=pltpu.CompilerParams(
            dimension_semantics=("parallel", "arbitrary")),
        cost_estimate=pl.CostEstimate(
            flops=4 * nc * s, transcendentals=0,
            bytes_accessed=2 * nc * s * itemsize + nc * LANES * 4),
    )(p3, t3)
    return jnp.sum(out.reshape(nc, LANES), axis=-1)


def _per_channel_weighted_sq_none(p, t, w_nc):
    """Elementwise w[n,c] * (p - t)^2 without streaming a broadcast weight."""
    shape = p.shape
    nc = shape[0] * shape[1]
    s = math.prod(shape[2:])
    rpc = s // LANES
    p3 = p.reshape(nc, rpc, LANES)
    t3 = t.reshape(nc, rpc, LANES)
    w3 = jnp.broadcast_to(w_nc.astype(p.dtype).reshape(nc, 1, 1), (nc, 1, LANES))
    itemsize = jnp.dtype(p.dtype).itemsize
    cb, rb = _pc_block_geometry(nc, rpc, itemsize, _none_block_bytes())
    grid = (pl.cdiv(nc, cb), pl.cdiv(rpc, rb))

    blk = pl.BlockSpec((cb, rb, LANES), lambda g, j: (g, j, 0))
    out3 = pl.pallas_call(
        _pc_wsq_none_kernel,
        out_shape=jax.ShapeDtypeStruct((nc, rpc, LANES), p.dtype),
        grid_spec=pltpu.PrefetchScalarGridSpec(
            num_scalar_prefetch=0,
            grid=grid,
            in_specs=[blk, blk,
                      pl.BlockSpec((cb, 1, LANES), lambda g, j: (g, 0, 0))],
            out_specs=blk),
        compiler_params=pltpu.CompilerParams(
            dimension_semantics=("parallel", "arbitrary")),
        cost_estimate=pl.CostEstimate(
            flops=3 * nc * s, transcendentals=0,
            bytes_accessed=3 * nc * s * itemsize + nc * LANES * itemsize),
    )(p3, t3, w3)
    return out3.reshape(shape)


# ----------------------------- weight plumbing -------------------------------

def _per_channel_weight(weight, pred_shape):
    """If `weight` varies only over the leading (batch, channel) dims — e.g.
    (N,C,1,1), (1,C,1,1), (N,1,1,1) — and the per-channel spatial size is a
    multiple of 128, return it as a flat (N*C,) f32 vector; else None."""
    if weight.ndim != len(pred_shape) or len(pred_shape) < 3:
        return None
    if any(int(d) != 1 for d in weight.shape[2:]):
        return None
    n, c = int(pred_shape[0]), int(pred_shape[1])
    if int(weight.shape[0]) not in (1, n) or int(weight.shape[1]) not in (1, c):
        return None
    if math.prod(pred_shape[2:]) % LANES != 0:
        return None
    w2 = jnp.broadcast_to(weight.reshape(weight.shape[0], weight.shape[1]), (n, c))
    return w2.reshape(n * c).astype(jnp.float32)


def _mean_denominator(weight, pred_shape, bcast_wsum):
    """basicsr weight_reduce_loss 'mean' denominator:
         weight.sum()        if the weight's channel dim matches pred's
         weight.sum() * C    if the weight is channel-singleton.
    `bcast_wsum` (in-kernel sum of the broadcast weight) is used when weight is
    full-shape (the two coincide) so no second pass over HBM is needed."""
    ndim = len(pred_shape)
    c = pred_shape[1] if ndim > 1 else 1
    if tuple(weight.shape) == tuple(pred_shape) and bcast_wsum is not None:
        return bcast_wsum
    scale = c if (weight.ndim == ndim and ndim > 1 and weight.shape[1] == 1) else 1
    return jnp.sum(weight.astype(jnp.float32)) * scale


# ----------------------------- module ---------------------------------------

class MSELoss:
    """MSE (L2) loss matching basicsr/pyiqa MSELoss forward semantics."""

    def __init__(self, loss_weight=1.0, reduction='mean'):
        if reduction not in ('none', 'mean', 'sum'):
            raise ValueError(f'Unsupported reduction mode: {reduction}. '
                             "Supported ones are: ['none', 'mean', 'sum']")
        self.loss_weight = loss_weight
        self.reduction = reduction

    def __call__(self, pred, target, weight=None, **kwargs):
        assert pred.shape == target.shape
        numel = math.prod(pred.shape) if pred.ndim > 0 else 1
        w_nc = _per_channel_weight(weight, pred.shape) if weight is not None else None

        if self.reduction == 'none':
            if weight is None:
                p2d, n = _to_slab(pred)
                t2d, _ = _to_slab(target)
                out2d = _elementwise_sq(p2d, t2d)
                out = out2d.reshape(-1)[:n].reshape(pred.shape)
            elif w_nc is not None:
                out = _per_channel_weighted_sq_none(pred, target, w_nc)
            else:
                wfull = jnp.broadcast_to(weight, pred.shape).astype(pred.dtype)
                p2d, n = _to_slab(pred)
                t2d, _ = _to_slab(target)
                w2d, _ = _to_slab(wfull)
                out2d = _elementwise_sq(p2d, t2d, w2d)
                out = out2d.reshape(-1)[:n].reshape(pred.shape)
            return self.loss_weight * out

        # ---- 'mean' / 'sum' ----
        if weight is None:
            p2d, _ = _to_slab(pred)
            t2d, _ = _to_slab(target)
            sse = jnp.sum(_launch_flat_reduction(_sse_kernel, [p2d, t2d], 1))
            val = sse / jnp.float32(numel) if self.reduction == 'mean' else sse
        elif w_nc is not None:
            # Per-(N,C) scalar weight: 2 HBM streams + tiny JAX weighting.
            sse_pc = _per_channel_sse(pred, target)
            wsse = jnp.sum(w_nc * sse_pc)
            if self.reduction == 'sum':
                val = wsse
            else:
                val = wsse / _mean_denominator(weight, pred.shape, None)
        else:
            wfull = jnp.broadcast_to(weight, pred.shape)
            p2d, _ = _to_slab(pred)
            t2d, _ = _to_slab(target)
            w2d, _ = _to_slab(wfull)
            o_sq, o_w = _launch_flat_reduction(_wsse_kernel, [p2d, t2d, w2d], 2)
            wsse = jnp.sum(o_sq)
            if self.reduction == 'sum':
                val = wsse
            else:
                val = wsse / _mean_denominator(weight, pred.shape, jnp.sum(o_w))
        return self.loss_weight * val.astype(pred.dtype)


# ----------------------------- demo -----------------------------------------

if __name__ == "__main__":
    key = jax.random.PRNGKey(0)
    k1, k2, k3, k4 = jax.random.split(key, 4)
    N, C, H, W = 2, 4, 16, 16
    pred = jax.random.normal(k1, (N, C, H, W), dtype=jnp.float32)
    target = jax.random.normal(k2, (N, C, H, W), dtype=jnp.float32)
    weight = jax.random.uniform(k3, (N, C, H, W), dtype=jnp.float32)
    wchan = jax.random.uniform(k4, (N, C, 1, 1), dtype=jnp.float32) + 0.1

    # unweighted mean / sum / none
    out = jax.block_until_ready(MSELoss(loss_weight=1.0, reduction='mean')(pred, target))
    assert jnp.allclose(out, jnp.mean((pred - target) ** 2), rtol=1e-5, atol=1e-6)

    out_sum = jax.block_until_ready(MSELoss(reduction='sum')(pred, target))
    assert jnp.allclose(out_sum, jnp.sum((pred - target) ** 2), rtol=1e-5)

    out_none = jax.block_until_ready(MSELoss(reduction='none')(pred, target))
    assert out_none.shape == (N, C, H, W)
    assert jnp.allclose(out_none, (pred - target) ** 2, rtol=1e-5)

    # full-shape element-wise weight ('mean' divides by weight.sum())
    out_wmean = jax.block_until_ready(MSELoss()(pred, target, weight=weight))
    ref_wmean = jnp.sum(weight * (pred - target) ** 2) / jnp.sum(weight)
    assert jnp.allclose(out_wmean, ref_wmean, rtol=1e-5)

    # per-channel scalar weight: no broadcast materialization, 2-stream kernel
    wb = jnp.broadcast_to(wchan, pred.shape)
    out_cmean = jax.block_until_ready(MSELoss()(pred, target, weight=wchan))
    ref_cmean = jnp.sum(wb * (pred - target) ** 2) / jnp.sum(wchan)  # basicsr: C>1 -> w.sum()
    assert jnp.allclose(out_cmean, ref_cmean, rtol=1e-5)

    out_csum = jax.block_until_ready(MSELoss(reduction='sum')(pred, target, weight=wchan))
    assert jnp.allclose(out_csum, jnp.sum(wb * (pred - target) ** 2), rtol=1e-5)

    out_cnone = jax.block_until_ready(MSELoss(reduction='none')(pred, target, weight=wchan))
    assert jnp.allclose(out_cnone, wb * (pred - target) ** 2, rtol=1e-5)

    # Stress ragged-block masking, index clamping and the core-split machinery
    # at small sizes by forcing tiny blocks (module-level test hook).
    _TEST_BLOCK_ROWS = 8
    k5, k6, k7 = jax.random.split(k1, 3)
    p_big = jax.random.normal(k5, (2, 4, 33, 64), dtype=jnp.float32)   # 132 rows -> 17 blocks
    t_big = jax.random.normal(k6, (2, 4, 33, 64), dtype=jnp.float32)
    out_big = jax.block_until_ready(MSELoss(reduction='sum')(p_big, t_big))
    assert jnp.allclose(out_big, jnp.sum((p_big - t_big) ** 2), rtol=1e-4)
    out_big_none = jax.block_until_ready(MSELoss(reduction='none')(p_big, t_big))
    assert jnp.allclose(out_big_none, (p_big - t_big) ** 2, rtol=1e-5)

    # per-channel path with a ragged spatial tail (rpc=12 not a multiple of rb=8)
    p_pc = jax.random.normal(k7, (1, 3, 24, 64), dtype=jnp.float32)
    t_pc = jax.random.normal(k5, (1, 3, 24, 64), dtype=jnp.float32)
    w_pc = jax.random.uniform(k6, (1, 3, 1, 1), dtype=jnp.float32) + 0.1
    out_pc = jax.block_until_ready(MSELoss()(p_pc, t_pc, weight=w_pc))
    wb_pc = jnp.broadcast_to(w_pc, p_pc.shape)
    ref_pc = jnp.sum(wb_pc * (p_pc - t_pc) ** 2) / jnp.sum(w_pc)
    assert jnp.allclose(out_pc, ref_pc, rtol=1e-4)
    _TEST_BLOCK_ROWS = None

    print("KERNEL_OK")
</pallas_src>

<mosaic_0001>
module attributes {stable_mosaic.version = 11 : i64} {
  func.func @_sse_kernel(%arg0: i32, %arg1: memref<16x128xf32, #tpu.memory_space<vmem>>, %arg2: memref<16x128xf32, #tpu.memory_space<vmem>>, %arg3: memref<8x128xf32, #tpu.memory_space<vmem>>) attributes {dimension_semantics = [#tpu.dimension_semantics<arbitrary>], iteration_bounds = array<i64: 1>, scalar_prefetch = 0 : i64, scratch_operands = 0 : i64, tpu.core_type = #tpu.core_type<tc>, window_params = [{transform_indices = @transform_0, window_bounds = array<i64: 16, 128>}, {transform_indices = @transform_1, window_bounds = array<i64: 16, 128>}, {pipeline_mode = #tpu.pipeline_mode<synchronous>, transform_indices = @transform_2, window_bounds = array<i64: 8, 128>}]} {
    %c0_i32 = arith.constant 0 : i32
    %0 = arith.cmpi eq, %arg0, %c0_i32 : i32
    %1 = arith.extui %0 : i1 to i32
    %c0_i32_0 = arith.constant 0 : i32
    %2 = arith.cmpi ne, %1, %c0_i32_0 : i32
    scf.if %2 {
      %cst_8 = arith.constant 0.000000e+00 : f32
      %12 = vector.broadcast %cst_8 : f32 to vector<8x128xf32>
      %c0_9 = arith.constant 0 : index
      %c0_10 = arith.constant 0 : index
      %13 = vector.load %arg3[%c0_9, %c0_10] : memref<8x128xf32, #tpu.memory_space<vmem>>, vector<8x128xf32>
      tpu.vector_store %arg3[%c0_9, %c0_10], %12 {strides = array<i32>} : memref<8x128xf32, #tpu.memory_space<vmem>>, vector<8x128xf32>,
    } else {
    }
    %c0 = arith.constant 0 : index
    %c0_1 = arith.constant 0 : index
    %3 = vector.load %arg1[%c0, %c0_1] : memref<16x128xf32, #tpu.memory_space<vmem>>, vector<16x128xf32>
    %c0_2 = arith.constant 0 : index
    %c0_3 = arith.constant 0 : index
    %4 = vector.load %arg2[%c0_2, %c0_3] : memref<16x128xf32, #tpu.memory_space<vmem>>, vector<16x128xf32>
    %5 = arith.subf %3, %4 : vector<16x128xf32>
    %6 = arith.mulf %5, %5 : vector<16x128xf32>
    %c0_4 = arith.constant 0 : index
    %c0_5 = arith.constant 0 : index
    %7 = vector.load %arg3[%c0_4, %c0_5] : memref<8x128xf32, #tpu.memory_space<vmem>>, vector<8x128xf32>
    %8 = vector.shape_cast %6 : vector<16x128xf32> to vector<2x8x128xf32>
    %cst = arith.constant dense<0.000000e+00> : vector<8x128xf32>
    %9 = vector.multi_reduction <add>, %8, %cst [0] : vector<2x8x128xf32> to vector<8x128xf32>
    %10 = arith.addf %7, %9 : vector<8x128xf32>
    %c0_6 = arith.constant 0 : index
    %c0_7 = arith.constant 0 : index
    %11 = vector.load %arg3[%c0_6, %c0_7] : memref<8x128xf32, #tpu.memory_space<vmem>>, vector<8x128xf32>
    tpu.vector_store %arg3[%c0_6, %c0_7], %10 {strides = array<i32>} : memref<8x128xf32, #tpu.memory_space<vmem>>, vector<8x128xf32>,
    return
  }
  func.func @transform_0(%arg0: i32) -> (i32, i32) {
    %c0_i32 = arith.constant 0 : i32
    %c0_i32_0 = arith.constant 0 : i32
    return %arg0, %c0_i32 : i32, i32
  }
  func.func @transform_1(%arg0: i32) -> (i32, i32) {
    %c0_i32 = arith.constant 0 : i32
    %c0_i32_0 = arith.constant 0 : i32
    return %arg0, %c0_i32 : i32, i32
  }
  func.func @transform_2(%arg0: i32) -> (i32, i32) {
    %c0_i32 = arith.constant 0 : i32
    %c0_i32_0 = arith.constant 0 : i32
    %c0_i32_1 = arith.constant 0 : i32
    return %c0_i32, %c0_i32_0 : i32, i32
  }
}

</mosaic_0001>

<bundles_post_ra>
// kernel: tpu_custom_call.1
= control target key start
LH: loop header
LB: loop body
LE: loop exit
PB: predicated region body
PF: predicated region fallthrough
CT: control target
= control target key end

     0   :  { %7 = vsyncpa [#allocation3], 0  ;;  %s174_s0 = inlined_call_operand.hbm [shape: f32[16,128], index: 0, kind: input, shape index: {}]   ;;  %s175_s1 = inlined_call_operand.hbm [shape: f32[16,128], index: 1, kind: input, shape index: {}]   ;;  %s176_s2 = inlined_call_operand.hbm [shape: f32[8,128], index: 2, kind: output, shape index: {}]  }
   0x1   :  { %8 = vsyncpa [#allocation6], 0 }
   0x2   :  { %9 = vsyncpa [#allocation4], 0  ;;  %s145_s9 = smov [#allocation2]  }
   0x3   :  { %s15_s10 = sshll.u32 %s145_s9, 4  ;;  %s16_s10 = int_to_ptr.vmem [resolvable:$true] %s15_s10 }
   0x4   :  { %s87_s11 = scalar_lea.vmem %s16_s10, 256  ;;  %p92_p1 = scmp.lt.s32.totalorder %s16_s10, %s16_s10 }
   0x5   :  { %p88_p0 = scmp.ne.s32.totalorder %s16_s10, %s87_s11  ;;  %p93_p2 = scmp.lt.s32.totalorder %s87_s11, %s87_s11 }
   0x7   :  { %p94_p3 = por %p93_p2, %p92_p1 }
   0x9   :  { %p95_p4 = pnand %p94_p3, %p88_p0 }
   0xb   :  { %98 = shalt.err (!%p95_p4)
}
   0xc   :  { %s146_s12 = smov 128   ;;  %s147_s13 = smov 8  }
   0xd   :  { %21 = dma.hbm_to_vmem [thread:$0]  %s174_s0, 256, %s16_s10, [#allocation3], %s146_s12, %s146_s12, %s147_s13  }
   0xe   :  { %s148_s16 = smov [#allocation5]  }
   0xf   :  { %s27_s17 = sshll.u32 %s148_s16, 4  ;;  %s28_s17 = int_to_ptr.vmem [resolvable:$true] %s27_s17 }
  0x10   :  { %s107_s18 = scalar_lea.vmem %s28_s17, 256  ;;  %p112_p6 = scmp.lt.s32.totalorder %s28_s17, %s28_s17 }
  0x11   :  { %p108_p5 = scmp.ne.s32.totalorder %s28_s17, %s107_s18  ;;  %p113_p7 = scmp.lt.s32.totalorder %s107_s18, %s107_s18 }
  0x13   :  { %p114_p8 = por %p113_p7, %p112_p6 }
  0x15   :  { %p115_p9 = pnand %p114_p8, %p108_p5 }
  0x17   :  { %118 = shalt.err (!%p115_p9)
}
  0x18   :  { %33 = dma.hbm_to_vmem [thread:$0]  %s175_s1, 256, %s28_s17, [#allocation6], %s146_s12, %s146_s12, %s147_s13  }
  0x19   :  { %139 = dma.done.wait [#allocation3], 256  }
  0x1a   :  { %140 = vsyncadd [#allocation3], 4294967040 }
  0x1b   :  { %141 = dma.done.wait [#allocation6], 256  }
  0x1c   :  { %142 = vsyncadd [#allocation6], 4294967040  ;;  %v45_v0 = vld [vmem:[#allocation2] sm:$0xff]  ;;  %v46_v1 = vld [vmem:[#allocation2 + $0x8] sm:$0xff]  ;;  %s149_s0 = smov [#allocation7]  }
  0x1d   :  { %v47_v2 = vld [vmem:[#allocation5] sm:$0xff]  ;;  %v48_v3 = vld [vmem:[#allocation5 + $0x8] sm:$0xff]  ;;  %s63_s21 = sshll.u32 %s149_s0, 4  ;;  %s64_s21 = int_to_ptr.vmem [resolvable:$true] %s63_s21 }
  0x1e   :  { %v49_v4 = vsub.f32 %v45_v0, %v47_v2  ;;  %v50_v5 = vsub.f32 %v46_v1, %v48_v3  ;;  %s119_s22 = scalar_lea.vmem %s64_s21, 128  ;;  %p124_p11 = scmp.lt.s32.totalorder %s64_s21, %s64_s21 }
  0x1f   :  { %p120_p10 = scmp.ne.s32.totalorder %s64_s21, %s119_s22  ;;  %p125_p12 = scmp.lt.s32.totalorder %s119_s22, %s119_s22 }
  0x20   :  { %v51_v6 = vmul.f32 %v49_v4, %v49_v4  ;;  %v52_v7 = vmul.f32 %v50_v5, %v50_v5 }
  0x21   :  { %p126_p13 = por %p125_p12, %p124_p11 }
  0x22   :  { %v54_v8 = vadd.f32 %v52_v7, %v51_v6 }
  0x23   :  { %p127_p0 = pnand %p126_p13, %p120_p10 }
  0x24   :  { %56 = vst [vmem:[#allocation7] sm:$0xff] %v54_v8 }
  0x25   :  { %130 = shalt.err (!%p127_p0)
}
  0x26   :  { %66 = dma.vmem_to_hbm [thread:$0]  %s64_s21, 128, %s176_s2, [#allocation4]  }
  0x27   :  { %143 = dma.done.wait [#allocation4], 128  }
  0x28   :  { %144 = vsyncadd [#allocation4], 4294967168 }
  0x29   :  { %70 = vsyncpa [#allocation3], 1 }
  0x2a   :  { %71 = vsyncpa [#allocation6], 1 }
  0x2b   :  { %72 = vsyncpa [#allocation4], 1 }

</bundles_post_ra>
